<compile_context>
chip_gen: v7x
topology: tpu7x:2x2x1
jax: 0.10.0
libtpu: 0.0.40
codegen_flags: <defaults>
</compile_context>

<pallas_src>
import jax
import jax.numpy as jnp
from jax.experimental import pallas as pl
from jax.experimental.pallas import tpu as pltpu


LANE = 128          # vreg lane width; all feature dims padded to this
LIN_DIM = 256       # Linear(hidden, 256)
PAD_CLASSES = LANE  # lane-dense logits slab; real logits are [:, :num_classes]
BN_EPS = 1e-5


# ---------------------------------------------------------------------------
# Fused kernel: everything lives in VMEM (shapes are small), grid = ()
# ---------------------------------------------------------------------------
def graphsage_kernel(
    flag_ref,                         # SMEM (1,) int32 : apply batch-norm iff != 0
    a_ref,                            # (NP, NP) bf16 row-normalized adjacency (mean aggr)
    p_ref,                            # (GP, NP) bf16 per-graph mean-pool matrix
    gmask_ref,                        # (GP, 1)  f32  1.0 iff graph non-empty (guards +b3)
    bnw_ref,                          # (GP, 1)  f32  BN row weights (valid_row / num_graphs)
    x_ref,                            # (NP, 128) bf16 input node features (lane-padded)
    w1_ref, b1_ref,                   # conv1: stacked (256, 128) bf16, (1, 128) f32
    w2_ref, b2_ref,                   # conv2: stacked (256, 128) bf16, (1, 128) f32
    w3_ref, b3_ref,                   # conv3: stacked (256, 128) bf16, (1, 128) f32
    wlin_ref, blin_ref,               # lin  : (128, 256) bf16, (1, 256) f32
    wlin2_ref, blin2_ref,             # lin2 : (256, 128) bf16, (1, 128) f32
    out_ref,                          # (GP, 128) f32
    slab_ref,                         # VMEM scratch (NP, 256) bf16 : [agg | h]
    y_scr,                            # VMEM scratch (GP, 256) f32
):
    a = a_ref[...]

    def aggregate_into_slab(h):
        # SAGEConv mean aggregation on the MXU; both stores cover a full,
        # lane-aligned 128-wide slab half -> unmasked vst, no relayout.
        agg = jnp.dot(a, h, preferred_element_type=jnp.float32)
        slab_ref[:, 0:LANE] = agg.astype(jnp.bfloat16)
        slab_ref[:, LANE:2 * LANE] = h

    def layer(w_ref, b_ref):
        # lin_l(agg) + lin_r(h) as ONE MXU matmul on the lane-aligned slab.
        return (
            jnp.dot(slab_ref[...], w_ref[...], preferred_element_type=jnp.float32)
            + b_ref[...]
        )

    # conv1 + relu (relu/cast in bf16)
    aggregate_into_slab(x_ref[...])
    h = jnp.maximum(layer(w1_ref, b1_ref).astype(jnp.bfloat16), 0)
    # conv2 + relu
    aggregate_into_slab(h)
    h = jnp.maximum(layer(w2_ref, b2_ref).astype(jnp.bfloat16), 0)

    # conv3 fused with global_mean_pool (reassociation; valid because conv3
    # has no ReLU and non-empty rows of P sum to 1).  Empty graphs: P row = 0
    # and gmask = 0, so they stay exactly 0 (matches PyTorch).
    aggregate_into_slab(h)
    pooled_cat = jnp.dot(p_ref[...], slab_ref[...],
                         preferred_element_type=jnp.float32)        # (GP, 256)
    pooled = (
        jnp.dot(pooled_cat.astype(jnp.bfloat16), w3_ref[...],
                preferred_element_type=jnp.float32)
        + gmask_ref[...] * b3_ref[...]
    )                                                                # (GP, 128)

    # lin
    y_scr[...] = (
        jnp.dot(pooled.astype(jnp.bfloat16), wlin_ref[...],
                preferred_element_type=jnp.float32)
        + blin_ref[...]
    )

    # fresh BatchNorm1d(256) in training mode -> batch statistics over the
    # REAL graph rows only (bnw = valid/num_graphs), gamma=1, beta=0.
    @pl.when(flag_ref[0] != 0)
    def _():
        y = y_scr[...]
        w = bnw_ref[...]
        mean = jnp.sum(y * w, axis=0, keepdims=True)
        var = jnp.sum((y - mean) ** 2 * w, axis=0, keepdims=True)
        y_scr[...] = (y - mean) * jax.lax.rsqrt(var + BN_EPS)

    # relu (bf16) + lin2 into the lane-dense 128-wide output slab
    y = jnp.maximum(y_scr[...].astype(jnp.bfloat16), 0)
    out_ref[...] = (
        jnp.dot(y, wlin2_ref[...], preferred_element_type=jnp.float32)
        + blin2_ref[...]
    )


# ---------------------------------------------------------------------------
# Parameter prep (pure glue, cacheable): lane-pad + stack lin_l/lin_r
# ---------------------------------------------------------------------------
def prepare_params(params):
    bf = jnp.bfloat16
    f_in = params["w1l"].shape[0]
    hidden = params["w1l"].shape[1]
    num_classes = params["wlin2"].shape[1]
    assert f_in <= LANE and hidden <= LANE and num_classes <= PAD_CLASSES

    def stack(wl, wr):
        # rows [0:fan_in) = W_l, rows [128:128+fan_in) = W_r, cols padded to 128
        w = jnp.zeros((2 * LANE, LANE), jnp.float32)
        w = w.at[: wl.shape[0], : wl.shape[1]].set(wl)
        w = w.at[LANE : LANE + wr.shape[0], : wr.shape[1]].set(wr)
        return w.astype(bf)

    def pad_bias(b, width):
        out = jnp.zeros((1, width), jnp.float32)
        return out.at[:, : b.shape[1]].set(b)

    wlin = (
        jnp.zeros((LANE, LIN_DIM), jnp.float32)
        .at[:hidden, :].set(params["wlin"]).astype(bf)
    )
    wlin2 = (
        jnp.zeros((LIN_DIM, PAD_CLASSES), jnp.float32)
        .at[:, :num_classes].set(params["wlin2"]).astype(bf)
    )

    return {
        "w1": stack(params["w1l"], params["w1r"]), "b1": pad_bias(params["b1"], LANE),
        "w2": stack(params["w2l"], params["w2r"]), "b2": pad_bias(params["b2"], LANE),
        "w3": stack(params["w3l"], params["w3r"]), "b3": pad_bias(params["b3"], LANE),
        "wlin": wlin, "blin": params["blin"].astype(jnp.float32),
        "wlin2": wlin2, "blin2": pad_bias(params["blin2"], PAD_CLASSES),
    }


def _round_up(v, m):
    return ((v + m - 1) // m) * m


# ---------------------------------------------------------------------------
# Wrapper: build dense aggregation / pooling operators (glue), call kernel
# ---------------------------------------------------------------------------
def graphsage_forward(x, edge_index, edge_weight, batch, params, num_graphs):
    # edge_weight is accepted for signature parity but unused (the PyTorch
    # forward never passes it to SAGEConv).
    del edge_weight
    n_nodes, n_feat = x.shape
    num_classes = params["wlin2"].shape[1]

    n_pad = max(8, _round_up(n_nodes, 8))
    g_pad = max(8, _round_up(num_graphs, 8))

    edge_index = edge_index.astype(jnp.int32)
    src, dst = edge_index[0], edge_index[1]

    # TODO(synk): cache a_mean / p_pool across calls on a static graph, or use
    # CSR offsets + scalar prefetch for in-kernel sparse aggregation; the dense
    # O(N^2) operator (built with a slow XLA scatter) dominates at real sizes.
    adj = jnp.zeros((n_pad, n_pad), jnp.float32).at[dst, src].add(1.0)
    deg = jnp.sum(adj, axis=1, keepdims=True)
    a_mean = (adj / jnp.maximum(deg, 1.0)).astype(jnp.bfloat16)

    # global_mean_pool operator, padded-G rows are all-zero
    batch_pad = jnp.full((n_pad,), -1, jnp.int32).at[:n_nodes].set(batch.astype(jnp.int32))
    onehot = (batch_pad[None, :] == jnp.arange(g_pad)[:, None]).astype(jnp.float32)
    counts = jnp.sum(onehot, axis=1, keepdims=True)
    p_pool = (onehot / jnp.maximum(counts, 1.0)).astype(jnp.bfloat16)
    gmask = (counts > 0).astype(jnp.float32)                       # (g_pad, 1)
    bnw = (
        (jnp.arange(g_pad) < num_graphs).astype(jnp.float32) / float(num_graphs)
    ).reshape(g_pad, 1)

    # BatchNorm condition: batch is not None and not all(batch == 0)
    flag = jnp.any(batch != 0).astype(jnp.int32).reshape((1,))

    # lane-pad node features to 128
    x_pad = (
        jnp.zeros((n_pad, LANE), jnp.float32)
        .at[:n_nodes, :n_feat].set(x).astype(jnp.bfloat16)
    )

    prep = prepare_params(params)
    inputs = (
        flag, a_mean, p_pool, gmask, bnw, x_pad,
        prep["w1"], prep["b1"],
        prep["w2"], prep["b2"],
        prep["w3"], prep["b3"],
        prep["wlin"], prep["blin"],
        prep["wlin2"], prep["blin2"],
    )

    vmem = pl.BlockSpec(memory_space=pltpu.MemorySpace.VMEM)
    smem = pl.BlockSpec(memory_space=pltpu.MemorySpace.SMEM)
    in_specs = [smem] + [vmem] * (len(inputs) - 1)

    # explicit VMEM budget sized from the real footprint (+ headroom)
    in_bytes = sum(int(v.size) * v.dtype.itemsize for v in inputs)
    scratch_bytes = n_pad * 2 * LANE * 2 + g_pad * LIN_DIM * 4
    out_bytes = g_pad * PAD_CLASSES * 4
    vmem_bytes = min(
        64 << 20,
        max(2 * (in_bytes + scratch_bytes + out_bytes) + (4 << 20), 16 << 20),
    )

    flops = (
        3 * 2 * n_pad * n_pad * LANE                 # three A @ h aggregations
        + 2 * 2 * n_pad * (2 * LANE) * LANE          # conv1 / conv2 layer matmuls
        + 2 * g_pad * n_pad * (2 * LANE)             # pool (P @ cat3)
        + 2 * g_pad * (2 * LANE) * LANE              # conv3 at graph granularity
        + 2 * g_pad * LANE * LIN_DIM                 # lin
        + 2 * g_pad * LIN_DIM * PAD_CLASSES          # lin2
    )
    cost = pl.CostEstimate(
        flops=flops, transcendentals=LIN_DIM, bytes_accessed=in_bytes + out_bytes
    )

    out_padded = pl.pallas_call(
        graphsage_kernel,
        out_shape=jax.ShapeDtypeStruct((g_pad, PAD_CLASSES), jnp.float32),
        in_specs=in_specs,
        out_specs=vmem,
        scratch_shapes=[
            pltpu.VMEM((n_pad, 2 * LANE), jnp.bfloat16),   # [agg | h] slab
            pltpu.VMEM((g_pad, LIN_DIM), jnp.float32),     # lin activations / BN
        ],
        compiler_params=pltpu.CompilerParams(vmem_limit_bytes=int(vmem_bytes)),
        cost_estimate=cost,
    )(*inputs)

    return out_padded[:num_graphs, :num_classes]


# ---------------------------------------------------------------------------
# Deterministic parameter init (synthetic; shapes match the PyTorch module)
# ---------------------------------------------------------------------------
def init_params(key, input_features, hidden, out_hidden=256, num_classes=2):
    def lin_w(k, fan_in, fan_out):
        # stored transposed (fan_in, fan_out) so the kernel does x @ W
        return (jax.random.normal(k, (fan_in, fan_out), jnp.float32)
                * (1.0 / jnp.sqrt(fan_in)))

    keys = jax.random.split(key, 16)
    p = {
        "w1l": lin_w(keys[0], input_features, hidden),
        "w1r": lin_w(keys[1], input_features, hidden),
        "b1": jax.random.normal(keys[2], (1, hidden), jnp.float32) * 0.01,
        "w2l": lin_w(keys[3], hidden, hidden),
        "w2r": lin_w(keys[4], hidden, hidden),
        "b2": jax.random.normal(keys[5], (1, hidden), jnp.float32) * 0.01,
        "w3l": lin_w(keys[6], hidden, hidden),
        "w3r": lin_w(keys[7], hidden, hidden),
        "b3": jax.random.normal(keys[8], (1, hidden), jnp.float32) * 0.01,
        "wlin": lin_w(keys[9], hidden, out_hidden),
        "blin": jax.random.normal(keys[10], (1, out_hidden), jnp.float32) * 0.01,
        "wlin2": lin_w(keys[11], out_hidden, num_classes),
        "blin2": jax.random.normal(keys[12], (1, num_classes), jnp.float32) * 0.01,
    }
    # NOTE: conv4 exists in __init__ but is never used in forward, so omitted.
    return p


if __name__ == "__main__":
    N_NODES = 64
    N_EDGES = 200
    IN_FEATURES = 16
    HIDDEN = 32
    N_GRAPHS = 2

    key = jax.random.PRNGKey(0)
    kx, ke1, ke2, kw, kp = jax.random.split(key, 5)

    x = jax.random.normal(kx, (N_NODES, IN_FEATURES), jnp.float32)
    src = jax.random.randint(ke1, (N_EDGES,), 0, N_NODES, jnp.int32)
    dst = jax.random.randint(ke2, (N_EDGES,), 0, N_NODES, jnp.int32)
    edge_index = jnp.stack([src, dst], axis=0)
    edge_weight = jax.random.uniform(kw, (N_EDGES,), jnp.float32)  # unused by forward
    # two graphs: first half of nodes -> graph 0, second half -> graph 1
    batch = jnp.concatenate(
        [jnp.zeros((N_NODES // 2,), jnp.int32), jnp.ones((N_NODES // 2,), jnp.int32)]
    )

    params = init_params(kp, IN_FEATURES, HIDDEN)

    fwd = jax.jit(graphsage_forward, static_argnums=(5,))
    out = fwd(x, edge_index, edge_weight, batch, params, N_GRAPHS)
    out = jax.block_until_ready(out)
    assert out.shape == (N_GRAPHS, 2) and out.dtype == jnp.float32
    print("KERNEL_OK")
</pallas_src>

<mosaic_0001>
module attributes {stable_mosaic.version = 11 : i64} {
  func.func @graphsage_kernel(%arg0: memref<1xi32, #tpu.memory_space<smem>>, %arg1: memref<64x64xbf16, #tpu.memory_space<vmem>>, %arg2: memref<8x64xbf16, #tpu.memory_space<vmem>>, %arg3: memref<8x1xf32, #tpu.memory_space<vmem>>, %arg4: memref<8x1xf32, #tpu.memory_space<vmem>>, %arg5: memref<64x128xbf16, #tpu.memory_space<vmem>>, %arg6: memref<256x128xbf16, #tpu.memory_space<vmem>>, %arg7: memref<1x128xf32, #tpu.memory_space<vmem>>, %arg8: memref<256x128xbf16, #tpu.memory_space<vmem>>, %arg9: memref<1x128xf32, #tpu.memory_space<vmem>>, %arg10: memref<256x128xbf16, #tpu.memory_space<vmem>>, %arg11: memref<1x128xf32, #tpu.memory_space<vmem>>, %arg12: memref<128x256xbf16, #tpu.memory_space<vmem>>, %arg13: memref<1x256xf32, #tpu.memory_space<vmem>>, %arg14: memref<256x128xbf16, #tpu.memory_space<vmem>>, %arg15: memref<1x128xf32, #tpu.memory_space<vmem>>, %arg16: memref<8x128xf32, #tpu.memory_space<vmem>>, %arg17: memref<64x256xbf16, #tpu.memory_space<vmem>>, %arg18: memref<8x256xf32, #tpu.memory_space<vmem>>) attributes {dimension_semantics = [], scalar_prefetch = 0 : i64, scratch_operands = 2 : i64, tpu.core_type = #tpu.core_type<tc>} {
    %c0 = arith.constant 0 : index
    %c0_0 = arith.constant 0 : index
    %0 = vector.load %arg1[%c0, %c0_0] : memref<64x64xbf16, #tpu.memory_space<vmem>>, vector<64x64xbf16>
    %c0_1 = arith.constant 0 : index
    %c0_2 = arith.constant 0 : index
    %1 = vector.load %arg5[%c0_1, %c0_2] : memref<64x128xbf16, #tpu.memory_space<vmem>>, vector<64x128xbf16>
    %cst = arith.constant dense<0.000000e+00> : vector<64x128xf32>
    %2 = tpu.matmul %0, %1, %cst {dimension_numbers = #tpu.dot_dimension_numbers<[1], [0], [0], [1], [0, 0, 1, 1], [], []>} : vector<64x64xbf16>, vector<64x128xbf16>, vector<64x128xf32> -> vector<64x128xf32>
    %3 = arith.truncf %2 : vector<64x128xf32> to vector<64x128xbf16>
    %c0_3 = arith.constant 0 : index
    %c0_4 = arith.constant 0 : index
    %4 = vector.load %arg17[%c0_3, %c0_4] : memref<64x256xbf16, #tpu.memory_space<vmem>>, vector<64x128xbf16>
    tpu.vector_store %arg17[%c0_3, %c0_4], %3 {strides = array<i32>} : memref<64x256xbf16, #tpu.memory_space<vmem>>, vector<64x128xbf16>,
    %c0_5 = arith.constant 0 : index
    %c128 = arith.constant 128 : index
    %5 = vector.load %arg17[%c0_5, %c128] : memref<64x256xbf16, #tpu.memory_space<vmem>>, vector<64x128xbf16>
    tpu.vector_store %arg17[%c0_5, %c128], %1 {strides = array<i32>} : memref<64x256xbf16, #tpu.memory_space<vmem>>, vector<64x128xbf16>,
    %c0_6 = arith.constant 0 : index
    %c0_7 = arith.constant 0 : index
    %6 = vector.load %arg17[%c0_6, %c0_7] : memref<64x256xbf16, #tpu.memory_space<vmem>>, vector<64x256xbf16>
    %c0_8 = arith.constant 0 : index
    %c0_9 = arith.constant 0 : index
    %7 = vector.load %arg6[%c0_8, %c0_9] : memref<256x128xbf16, #tpu.memory_space<vmem>>, vector<256x128xbf16>
    %cst_10 = arith.constant dense<0.000000e+00> : vector<64x128xf32>
    %8 = tpu.matmul %6, %7, %cst_10 {dimension_numbers = #tpu.dot_dimension_numbers<[1], [0], [0], [1], [0, 0, 1, 1], [], []>} : vector<64x256xbf16>, vector<256x128xbf16>, vector<64x128xf32> -> vector<64x128xf32>
    %c0_11 = arith.constant 0 : index
    %c0_12 = arith.constant 0 : index
    %9 = vector.load %arg7[%c0_11, %c0_12] : memref<1x128xf32, #tpu.memory_space<vmem>>, vector<1x128xf32>
    %10 = vector.broadcast %9 : vector<1x128xf32> to vector<64x128xf32>
    %11 = arith.addf %8, %10 : vector<64x128xf32>
    %12 = arith.truncf %11 : vector<64x128xf32> to vector<64x128xbf16>
    %cst_13 = arith.constant 0.000000e+00 : bf16
    %13 = vector.broadcast %cst_13 : bf16 to vector<64x128xbf16>
    %14 = arith.maximumf %12, %13 : vector<64x128xbf16>
    %cst_14 = arith.constant dense<0.000000e+00> : vector<64x128xf32>
    %15 = tpu.matmul %0, %14, %cst_14 {dimension_numbers = #tpu.dot_dimension_numbers<[1], [0], [0], [1], [0, 0, 1, 1], [], []>} : vector<64x64xbf16>, vector<64x128xbf16>, vector<64x128xf32> -> vector<64x128xf32>
    %16 = arith.truncf %15 : vector<64x128xf32> to vector<64x128xbf16>
    %c0_15 = arith.constant 0 : index
    %c0_16 = arith.constant 0 : index
    %17 = vector.load %arg17[%c0_15, %c0_16] : memref<64x256xbf16, #tpu.memory_space<vmem>>, vector<64x128xbf16>
    tpu.vector_store %arg17[%c0_15, %c0_16], %16 {strides = array<i32>} : memref<64x256xbf16, #tpu.memory_space<vmem>>, vector<64x128xbf16>,
    %c0_17 = arith.constant 0 : index
    %c128_18 = arith.constant 128 : index
    %18 = vector.load %arg17[%c0_17, %c128_18] : memref<64x256xbf16, #tpu.memory_space<vmem>>, vector<64x128xbf16>
    tpu.vector_store %arg17[%c0_17, %c128_18], %14 {strides = array<i32>} : memref<64x256xbf16, #tpu.memory_space<vmem>>, vector<64x128xbf16>,
    %c0_19 = arith.constant 0 : index
    %c0_20 = arith.constant 0 : index
    %19 = vector.load %arg17[%c0_19, %c0_20] : memref<64x256xbf16, #tpu.memory_space<vmem>>, vector<64x256xbf16>
    %c0_21 = arith.constant 0 : index
    %c0_22 = arith.constant 0 : index
    %20 = vector.load %arg8[%c0_21, %c0_22] : memref<256x128xbf16, #tpu.memory_space<vmem>>, vector<256x128xbf16>
    %cst_23 = arith.constant dense<0.000000e+00> : vector<64x128xf32>
    %21 = tpu.matmul %19, %20, %cst_23 {dimension_numbers = #tpu.dot_dimension_numbers<[1], [0], [0], [1], [0, 0, 1, 1], [], []>} : vector<64x256xbf16>, vector<256x128xbf16>, vector<64x128xf32> -> vector<64x128xf32>
    %c0_24 = arith.constant 0 : index
    %c0_25 = arith.constant 0 : index
    %22 = vector.load %arg9[%c0_24, %c0_25] : memref<1x128xf32, #tpu.memory_space<vmem>>, vector<1x128xf32>
    %23 = vector.broadcast %22 : vector<1x128xf32> to vector<64x128xf32>
    %24 = arith.addf %21, %23 : vector<64x128xf32>
    %25 = arith.truncf %24 : vector<64x128xf32> to vector<64x128xbf16>
    %cst_26 = arith.constant 0.000000e+00 : bf16
    %26 = vector.broadcast %cst_26 : bf16 to vector<64x128xbf16>
    %27 = arith.maximumf %25, %26 : vector<64x128xbf16>
    %cst_27 = arith.constant dense<0.000000e+00> : vector<64x128xf32>
    %28 = tpu.matmul %0, %27, %cst_27 {dimension_numbers = #tpu.dot_dimension_numbers<[1], [0], [0], [1], [0, 0, 1, 1], [], []>} : vector<64x64xbf16>, vector<64x128xbf16>, vector<64x128xf32> -> vector<64x128xf32>
    %29 = arith.truncf %28 : vector<64x128xf32> to vector<64x128xbf16>
    %c0_28 = arith.constant 0 : index
    %c0_29 = arith.constant 0 : index
    %30 = vector.load %arg17[%c0_28, %c0_29] : memref<64x256xbf16, #tpu.memory_space<vmem>>, vector<64x128xbf16>
    tpu.vector_store %arg17[%c0_28, %c0_29], %29 {strides = array<i32>} : memref<64x256xbf16, #tpu.memory_space<vmem>>, vector<64x128xbf16>,
    %c0_30 = arith.constant 0 : index
    %c128_31 = arith.constant 128 : index
    %31 = vector.load %arg17[%c0_30, %c128_31] : memref<64x256xbf16, #tpu.memory_space<vmem>>, vector<64x128xbf16>
    tpu.vector_store %arg17[%c0_30, %c128_31], %27 {strides = array<i32>} : memref<64x256xbf16, #tpu.memory_space<vmem>>, vector<64x128xbf16>,
    %c0_32 = arith.constant 0 : index
    %c0_33 = arith.constant 0 : index
    %32 = vector.load %arg2[%c0_32, %c0_33] : memref<8x64xbf16, #tpu.memory_space<vmem>>, vector<8x64xbf16>
    %c0_34 = arith.constant 0 : index
    %c0_35 = arith.constant 0 : index
    %33 = vector.load %arg17[%c0_34, %c0_35] : memref<64x256xbf16, #tpu.memory_space<vmem>>, vector<64x256xbf16>
    %cst_36 = arith.constant dense<0.000000e+00> : vector<8x256xf32>
    %34 = tpu.matmul %32, %33, %cst_36 {dimension_numbers = #tpu.dot_dimension_numbers<[1], [0], [0], [1], [0, 0, 1, 1], [], []>} : vector<8x64xbf16>, vector<64x256xbf16>, vector<8x256xf32> -> vector<8x256xf32>
    %35 = arith.truncf %34 : vector<8x256xf32> to vector<8x256xbf16>
    %c0_37 = arith.constant 0 : index
    %c0_38 = arith.constant 0 : index
    %36 = vector.load %arg10[%c0_37, %c0_38] : memref<256x128xbf16, #tpu.memory_space<vmem>>, vector<256x128xbf16>
    %cst_39 = arith.constant dense<0.000000e+00> : vector<8x128xf32>
    %37 = tpu.matmul %35, %36, %cst_39 {dimension_numbers = #tpu.dot_dimension_numbers<[1], [0], [0], [1], [0, 0, 1, 1], [], []>} : vector<8x256xbf16>, vector<256x128xbf16>, vector<8x128xf32> -> vector<8x128xf32>
    %c0_40 = arith.constant 0 : index
    %c0_41 = arith.constant 0 : index
    %38 = vector.load %arg3[%c0_40, %c0_41] : memref<8x1xf32, #tpu.memory_space<vmem>>, vector<8x1xf32>
    %c0_42 = arith.constant 0 : index
    %c0_43 = arith.constant 0 : index
    %39 = vector.load %arg11[%c0_42, %c0_43] : memref<1x128xf32, #tpu.memory_space<vmem>>, vector<1x128xf32>
    %40 = vector.broadcast %38 : vector<8x1xf32> to vector<8x128xf32>
    %41 = vector.broadcast %39 : vector<1x128xf32> to vector<8x128xf32>
    %42 = arith.mulf %40, %41 : vector<8x128xf32>
    %43 = arith.addf %37, %42 : vector<8x128xf32>
    %44 = arith.truncf %43 : vector<8x128xf32> to vector<8x128xbf16>
    %c0_44 = arith.constant 0 : index
    %c0_45 = arith.constant 0 : index
    %45 = vector.load %arg12[%c0_44, %c0_45] : memref<128x256xbf16, #tpu.memory_space<vmem>>, vector<128x256xbf16>
    %cst_46 = arith.constant dense<0.000000e+00> : vector<8x256xf32>
    %46 = tpu.matmul %44, %45, %cst_46 {dimension_numbers = #tpu.dot_dimension_numbers<[1], [0], [0], [1], [0, 0, 1, 1], [], []>} : vector<8x128xbf16>, vector<128x256xbf16>, vector<8x256xf32> -> vector<8x256xf32>
    %c0_47 = arith.constant 0 : index
    %c0_48 = arith.constant 0 : index
    %47 = vector.load %arg13[%c0_47, %c0_48] : memref<1x256xf32, #tpu.memory_space<vmem>>, vector<1x256xf32>
    %48 = vector.broadcast %47 : vector<1x256xf32> to vector<8x256xf32>
    %49 = arith.addf %46, %48 : vector<8x256xf32>
    %c0_49 = arith.constant 0 : index
    %c0_50 = arith.constant 0 : index
    %50 = vector.load %arg18[%c0_49, %c0_50] : memref<8x256xf32, #tpu.memory_space<vmem>>, vector<8x256xf32>
    tpu.vector_store %arg18[%c0_49, %c0_50], %49 {strides = array<i32>} : memref<8x256xf32, #tpu.memory_space<vmem>>, vector<8x256xf32>,
    %c0_51 = arith.constant 0 : index
    %51 = memref.load %arg0[%c0_51] : memref<1xi32, #tpu.memory_space<smem>>
    %c0_i32 = arith.constant 0 : i32
    %52 = arith.cmpi ne, %51, %c0_i32 : i32
    %53 = arith.extui %52 : i1 to i32
    %c0_i32_52 = arith.constant 0 : i32
    %54 = arith.cmpi ne, %53, %c0_i32_52 : i32
    scf.if %54 {
      %c0_63 = arith.constant 0 : index
      %c0_64 = arith.constant 0 : index
      %65 = vector.load %arg18[%c0_63, %c0_64] : memref<8x256xf32, #tpu.memory_space<vmem>>, vector<8x256xf32>
      %c0_65 = arith.constant 0 : index
      %c0_66 = arith.constant 0 : index
      %66 = vector.load %arg4[%c0_65, %c0_66] : memref<8x1xf32, #tpu.memory_space<vmem>>, vector<8x1xf32>
      %67 = vector.broadcast %66 : vector<8x1xf32> to vector<8x256xf32>
      %68 = arith.mulf %65, %67 : vector<8x256xf32>
      %cst_67 = arith.constant dense<0.000000e+00> : vector<256xf32>
      %69 = vector.multi_reduction <add>, %68, %cst_67 [0] : vector<8x256xf32> to vector<256xf32>
      %70 = vector.shape_cast %69 : vector<256xf32> to vector<1x256xf32>
      %71 = vector.broadcast %70 : vector<1x256xf32> to vector<8x256xf32>
      %72 = arith.subf %65, %71 : vector<8x256xf32>
      %73 = arith.mulf %72, %72 : vector<8x256xf32>
      %74 = vector.broadcast %66 : vector<8x1xf32> to vector<8x256xf32>
      %75 = arith.mulf %73, %74 : vector<8x256xf32>
      %cst_68 = arith.constant dense<0.000000e+00> : vector<256xf32>
      %76 = vector.multi_reduction <add>, %75, %cst_68 [0] : vector<8x256xf32> to vector<256xf32>
      %77 = vector.shape_cast %76 : vector<256xf32> to vector<1x256xf32>
      %78 = vector.broadcast %70 : vector<1x256xf32> to vector<8x256xf32>
      %79 = arith.subf %65, %78 : vector<8x256xf32>
      %cst_69 = arith.constant 9.99999974E-6 : f32
      %80 = vector.broadcast %cst_69 : f32 to vector<1x256xf32>
      %81 = arith.addf %77, %80 : vector<1x256xf32>
      %82 = math.rsqrt %81 : vector<1x256xf32>
      %83 = vector.broadcast %82 : vector<1x256xf32> to vector<8x256xf32>
      %84 = arith.mulf %79, %83 : vector<8x256xf32>
      %c0_70 = arith.constant 0 : index
      %c0_71 = arith.constant 0 : index
      %85 = vector.load %arg18[%c0_70, %c0_71] : memref<8x256xf32, #tpu.memory_space<vmem>>, vector<8x256xf32>
      tpu.vector_store %arg18[%c0_70, %c0_71], %84 {strides = array<i32>} : memref<8x256xf32, #tpu.memory_space<vmem>>, vector<8x256xf32>,
    } else {
    }
    %c0_53 = arith.constant 0 : index
    %c0_54 = arith.constant 0 : index
    %55 = vector.load %arg18[%c0_53, %c0_54] : memref<8x256xf32, #tpu.memory_space<vmem>>, vector<8x256xf32>
    %56 = arith.truncf %55 : vector<8x256xf32> to vector<8x256xbf16>
    %cst_55 = arith.constant 0.000000e+00 : bf16
    %57 = vector.broadcast %cst_55 : bf16 to vector<8x256xbf16>
    %58 = arith.maximumf %56, %57 : vector<8x256xbf16>
    %c0_56 = arith.constant 0 : index
    %c0_57 = arith.constant 0 : index
    %59 = vector.load %arg14[%c0_56, %c0_57] : memref<256x128xbf16, #tpu.memory_space<vmem>>, vector<256x128xbf16>
    %cst_58 = arith.constant dense<0.000000e+00> : vector<8x128xf32>
    %60 = tpu.matmul %58, %59, %cst_58 {dimension_numbers = #tpu.dot_dimension_numbers<[1], [0], [0], [1], [0, 0, 1, 1], [], []>} : vector<8x256xbf16>, vector<256x128xbf16>, vector<8x128xf32> -> vector<8x128xf32>
    %c0_59 = arith.constant 0 : index
    %c0_60 = arith.constant 0 : index
    %61 = vector.load %arg15[%c0_59, %c0_60] : memref<1x128xf32, #tpu.memory_space<vmem>>, vector<1x128xf32>
    %62 = vector.broadcast %61 : vector<1x128xf32> to vector<8x128xf32>
    %63 = arith.addf %60, %62 : vector<8x128xf32>
    %c0_61 = arith.constant 0 : index
    %c0_62 = arith.constant 0 : index
    %64 = vector.load %arg16[%c0_61, %c0_62] : memref<8x128xf32, #tpu.memory_space<vmem>>, vector<8x128xf32>
    tpu.vector_store %arg16[%c0_61, %c0_62], %63 {strides = array<i32>} : memref<8x128xf32, #tpu.memory_space<vmem>>, vector<8x128xf32>,
    return
  }
}

</mosaic_0001>

<bundles_post_ra>
// kernel: graphsage_forward.1
= control target key start
LH: loop header
LB: loop body
LE: loop exit
PB: predicated region body
PF: predicated region fallthrough
CT: control target
= control target key end

     0   :  { %vm115_vm0 = vcmask 523264   ;;  %v1825_v36 = vmov 0   ;;  %s2267_s0 = inlined_call_operand.<no memory space> [shape: s32[1], index: 0, kind: input, shape index: {}]   ;;  %s2268_s4 = inlined_call_operand.vmem [shape: f32[8,1], index: 4, kind: input, shape index: {}]   ;;  %s2269_s5 = inlined_call_operand.vmem [shape: bf16[64,128], index: 5, kind: input, shape index: {}]   ;;  %s2270_s14 = inlined_call_operand.vmem [shape: bf16[256,128], index: 14, kind: input, shape index: {}]   ;;  %s2271_s15 = inlined_call_operand.vmem [shape: f32[1,128], index: 15, kind: input, shape index: {}]   ;;  %s2272_s16 = inlined_call_operand.vmem [shape: f32[8,128], index: 16, kind: output, shape index: {}]   ;;  %s2273_s1 = inlined_call_operand.vmem [shape: bf16[64,64], index: 1, kind: input, shape index: {}]   ;;  %s2274_s6 = inlined_call_operand.vmem [shape: bf16[256,128], index: 6, kind: input, shape index: {}]   ;;  %s2275_s8 = inlined_call_operand.vmem [shape: bf16[256,128], index: 8, kind: input, shape index: {}]   ;;  %s2276_s7 = inlined_call_operand.vmem [shape: f32[1,128], index: 7, kind: input, shape index: {}]   ;;  %s2277_s9 = inlined_call_operand.vmem [shape: f32[1,128], index: 9, kind: input, shape index: {}]   ;;  %s2278_s10 = inlined_call_operand.vmem [shape: bf16[256,128], index: 10, kind: input, shape index: {}]   ;;  %s2279_s2 = inlined_call_operand.vmem [shape: bf16[8,64], index: 2, kind: input, shape index: {}]   ;;  %s2280_s3 = inlined_call_operand.vmem [shape: f32[8,1], index: 3, kind: input, shape index: {}]   ;;  %s2281_s12 = inlined_call_operand.vmem [shape: bf16[128,256], index: 12, kind: input, shape index: {}]   ;;  %s2282_s11 = inlined_call_operand.vmem [shape: f32[1,128], index: 11, kind: input, shape index: {}]   ;;  %s2283_s13 = inlined_call_operand.vmem [shape: f32[1,256], index: 13, kind: input, shape index: {}]  }
   0x1   :  { %2284 = sst [smem:[#allocation5_spill]] %s2267_s0  ;;  %v1724_v0 = vld [vmem:[%s2269_s5] sm:$0xff]   ;;  %v1725_v1 = vld [vmem:[%s2269_s5 + $0x8] sm:$0xff]   ;;  %v1921_v2 = vld [vmem:[%s2269_s5 + $0x10] sm:$0xff]   ;;  %1723 = vset.pattern.permute.xlu0 %v1825_v36 }
   0x2   :  { %1673 = vmatprep.subr.bf16.mxu0 %v1724_v0  ;;  %380 = vmatprep.mubr.bf16.mxu1 %v1724_v0  ;;  %v1926_v3 = vld [vmem:[%s2273_s1] sm:$0xff]   ;;  %v1727_v4 = vld [vmem:[%s2269_s5 + $0x18] sm:$0xff]   ;;  %v1734_v7 = vld [vmem:[%s2274_s6 + $0x48] sm:$0xff]   ;;  %s2285_s20 = sld [smem:[#allocation5_spill]] }
   0x3   :  { %1674 = vmatpush3.bf16.msra.mxu0 %v1724_v0  ;;  %1681 = vmatprep.mubr.msk.bf16.mxu0 %vm115_vm0, %v1926_v3  ;;  %v1732_v5 = vld [vmem:[%s2274_s6 + $0x40] sm:$0xff]   ;;  %v1735_v8 = vld [vmem:[%s2274_s6 + $0x8] sm:$0xff]   ;;  %v1736_v9 = vld [vmem:[%s2274_s6 + $0x50] sm:$0xff]  }
   0x4   :  { %1675 = vmatprep.subr.bf16.mxu0 %v1725_v1  ;;  %v1733_v6 = vld [vmem:[%s2274_s6] sm:$0xff]   ;;  %1533 = vmatprep.subr.bf16.mxu1 %v1732_v5  ;;  %v1953_v10 = vld [vmem:[%s2273_s1 + $0x8] sm:$0xff]   ;;  %v1958_v11 = vld [vmem:[%s2273_s1 + $0x10] sm:$0xff]  }
   0x5   :  { %1534 = vmatpush3.bf16.msra.mxu1 %v1733_v6  ;;  %v1737_v12 = vld [vmem:[%s2274_s6 + $0x10] sm:$0xff]   ;;  %v1738_v13 = vld [vmem:[%s2274_s6 + $0x58] sm:$0xff]   ;;  %v1740_v15 = vld [vmem:[%s2274_s6 + $0x60] sm:$0xff]  }
   0x6   :  { %1535 = vmatprep.subr.bf16.mxu1 %v1734_v7  ;;  %v1739_v14 = vld [vmem:[%s2274_s6 + $0x18] sm:$0xff]   ;;  %v1741_v17 = vld [vmem:[%s2274_s6 + $0x20] sm:$0xff]   ;;  %v1742_v18 = vld [vmem:[%s2274_s6 + $0x68] sm:$0xff]  }
   0x7   :  { %1676 = vmatpush3.bf16.msra.mxu0 %v1725_v1  ;;  %v1979_v16 = vld [vmem:[%s2273_s1 + $0x18] sm:$0xff]   ;;  %v1743_v19 = vld [vmem:[%s2274_s6 + $0x28] sm:$0xff]   ;;  %v1744_v20 = vld [vmem:[%s2274_s6 + $0x70] sm:$0xff]  }
   0x8   :  { %1677 = vmatprep.subr.bf16.mxu0 %v1921_v2  ;;  %v1745_v21 = vld [vmem:[%s2274_s6 + $0x30] sm:$0xff]   ;;  %v1746_v22 = vld [vmem:[%s2274_s6 + $0x78] sm:$0xff]   ;;  %v1431_v41 = vld [vmem:[%s2276_s7] ss:$0 sm:$0xff]  ;;  %p1507_p0 = scmp.eq.s32.totalorder %s2285_s20, 0 }
   0x9   :  { %1536 = vmatpush3.bf16.msra.mxu1 %v1735_v8  ;;  %v1747_v23 = vld [vmem:[%s2274_s6 + $0x38] sm:$0xff]  }
   0xa   :  { %1537 = vmatprep.subr.bf16.mxu1 %v1736_v9 }
   0xb   :  { %1678 = vmatpush3.bf16.msra.mxu0 %v1921_v2 }
   0xc   :  { %1679 = vmatprep.subr.bf16.mxu0 %v1727_v4 }
   0xd   :  { %1538 = vmatpush3.bf16.msra.mxu1 %v1737_v12 }
   0xe   :  { %1539 = vmatprep.subr.bf16.mxu1 %v1738_v13 }
   0xf   :  { %1680 = vmatpush3.bf16.msra.mxu0 %v1727_v4 }
  0x11   :  { %1540 = vmatpush3.bf16.msra.mxu1 %v1739_v14 }
  0x12   :  { %1682 = vmatmul.mubr.msk.bf16.vlgmr.msra.gmra.mrb[0].mxu0 %vm115_vm0, %v1953_v10  ;;  %1541 = vmatprep.subr.bf16.mxu1 %v1740_v15 }
  0x13   :  { %1685 = vmatprep.mubr.msk.bf16.mxu0 %vm115_vm0, %v1958_v11 }
  0x15   :  { %1542 = vmatpush3.bf16.msra.mxu1 %v1741_v17  ;;  %v1748_v17 = vld [vmem:[%s2275_s8 + $0x40] sm:$0xff]  }
  0x16   :  { %1543 = vmatprep.subr.bf16.mxu1 %v1742_v18  ;;  %v1749_v18 = vld [vmem:[%s2275_s8] sm:$0xff]  }
  0x19   :  { %1544 = vmatpush3.bf16.msra.mxu1 %v1743_v19  ;;  %v1750_v19 = vld [vmem:[%s2275_s8 + $0x48] sm:$0xff]  }
  0x1a   :  { %1686 = vmatmul.mubr.msk.bf16.gmra.mrb[4].mxu0 %vm115_vm0, %v1979_v16  ;;  %1545 = vmatprep.subr.bf16.mxu1 %v1744_v20  ;;  %v1751_v20 = vld [vmem:[%s2275_s8 + $0x8] sm:$0xff]  }
  0x1b   :  { %1697 = vmatprep.mubr.msk.bf16.mxu0 %vm115_vm0, %v1926_v3 }
  0x1d   :  { %1546 = vmatpush3.bf16.msra.mxu1 %v1745_v21  ;;  %v1752_v21 = vld [vmem:[%s2275_s8 + $0x50] sm:$0xff]  }
  0x1e   :  { %1547 = vmatprep.subr.bf16.mxu1 %v1746_v22  ;;  %v1753_v22 = vld [vmem:[%s2275_s8 + $0x10] sm:$0xff]  }
  0x21   :  { %1548 = vmatpush3.bf16.msra.mxu1 %v1747_v23  ;;  %v1754_v23 = vld [vmem:[%s2275_s8 + $0x58] sm:$0xff]  }
  0xe5   :  { %v1683_v24 = vpop.f32.mrb[0].mxu0 }
  0xe6   :  { %v162_v25 = vpop.f32.mrb[1].mxu0 }
  0xe7   :  { %v1684_v26 = vpop.f32.mrb[2].mxu0 }
  0xe8   :  { %v194_v27 = vpack.c.bf16 %v1684_v26, %v1683_v24  ;;  %v165_v28 = vpop.f32.mrb[3].mxu0  ;;  %v1755_v24 = vld [vmem:[%s2275_s8 + $0x18] sm:$0xff]   ;;  %v1757_v26 = vld [vmem:[%s2275_s8 + $0x20] sm:$0xff]  }
  0xe9   :  { %v193_v29 = vpack.c.bf16 %v165_v28, %v162_v25  ;;  %v1756_v25 = vld [vmem:[%s2275_s8 + $0x60] sm:$0xff]   ;;  %v1759_v28 = vld [vmem:[%s2275_s8 + $0x28] sm:$0xff]  }
  0xeb   :  { %381 = vmatmul.mubr.bf16.vlgmr.msra.gmra.mrb[0].mxu1 %v193_v29  ;;  %v1760_v29 = vld [vmem:[%s2275_s8 + $0x70] sm:$0xff]  }
  0xec   :  { %388 = vmatprep.mubr.bf16.mxu1 %v1725_v1 }
  0xed   :  { %v1687_v30 = vpop.f32.mrb[4].mxu0 }
  0xee   :  { %v178_v31 = vpop.f32.mrb[5].mxu0 }
  0xef   :  { %v1688_v32 = vpop.f32.mrb[6].mxu0 }
  0xf0   :  { %v196_v33 = vpack.c.bf16 %v1688_v32, %v1687_v30  ;;  %v181_v34 = vpop.f32.mrb[7].mxu0  ;;  %v1761_v30 = vld [vmem:[%s2275_s8 + $0x30] sm:$0xff]   ;;  %v1763_v32 = vld [vmem:[%s2275_s8 + $0x38] sm:$0xff]  }
  0xf1   :  { %v195_v35 = vpack.c.bf16 %v181_v34, %v178_v31  ;;  %v1762_v31 = vld [vmem:[%s2275_s8 + $0x78] sm:$0xff]  }
  0xf3   :  { %389 = vmatmul.mubr.bf16.gmra.mrb[4].mxu1 %v194_v27  ;;  %v1758_v27 = vld [vmem:[%s2275_s8 + $0x68] sm:$0xff]  }
  0xf4   :  { %396 = vmatprep.mubr.bf16.mxu1 %v1921_v2 }
  0xfb   :  { %397 = vmatmul.mubr.bf16.gmra.mrb[8].mxu1 %v195_v35 }
  0xfc   :  { %404 = vmatprep.mubr.bf16.mxu1 %v1727_v4 }
 0x103   :  { %405 = vmatmul.mubr.bf16.gmra.mrb[12].mxu1 %v196_v33 }
 0x104   :  { %1713 = vmatprep.mubr.msk.bf16.mxu1 %vm115_vm0, %v1926_v3 }
 0x1be   :  { %v1549_v37 = vpop.f32.mrb[0].mxu1 }
 0x1bf   :  { %v1550_v38 = vpop.f32.mrb[1].mxu1 }
 0x1c0   :  { %v1551_v39 = vadd.f32 %v1550_v38, %v1549_v37  ;;  %v1552_v40 = vpop.f32.mrb[2].mxu1 }
 0x1c1   :  { %v1553_v42 = vpop.f32.mrb[3].mxu1 }
 0x1c2   :  { %v1554_v43 = vadd.f32 %v1553_v42, %v1552_v40  ;;  %v383_v44 = vadd.f32 %v1551_v39, %v1431_v41 }
 0x1c4   :  { %v386_v45 = vadd.f32 %v1554_v43, %v1431_v41 }
 0x1c6   :  { %v413_v46 = vpack.c.bf16 %v386_v45, %v383_v44  ;;  %v1555_v47 = vpop.f32.mrb[4].mxu1 }
 0x1c7   :  { %v1556_v48 = vpop.f32.mrb[5].mxu1 }
 0x1c8   :  { %v1557_v49 = vadd.f32 %v1556_v48, %v1555_v47  ;;  %v1558_v50 = vpop.f32.mrb[6].mxu1  ;;  %v417_v51 = vmax.bf16 %v1825_v36, %v413_v46 }
 0x1c9   :  { %v1559_v52 = vpop.f32.mrb[7].mxu1 }
 0x1ca   :  { %v1560_v53 = vadd.f32 %v1559_v52, %v1558_v50  ;;  %1689 = vmatprep.subr.bf16.mxu0 %v417_v51  ;;  %v391_v54 = vadd.f32 %v1557_v49, %v1431_v41  ;;  %v1452_v50 = vld [vmem:[%s2277_s9] ss:$0 sm:$0xff] }
 0x1cb   :  { %1690 = vmatpush3.bf16.msra.mxu0 %v417_v51 }
 0x1cc   :  { %v394_v55 = vadd.f32 %v1560_v53, %v1431_v41 }
 0x1ce   :  { %v414_v56 = vpack.c.bf16 %v394_v55, %v391_v54  ;;  %v1561_v57 = vpop.f32.mrb[8].mxu1 }
 0x1cf   :  { %v1562_v58 = vpop.f32.mrb[9].mxu1 }
 0x1d0   :  { %v1563_v59 = vadd.f32 %v1562_v58, %v1561_v57  ;;  %v1564_v60 = vpop.f32.mrb[10].mxu1  ;;  %v2015_v61 = vmax.bf16 %v1825_v36, %v414_v56 }
 0x1d1   :  { %v1565_v62 = vpop.f32.mrb[11].mxu1 }
 0x1d2   :  { %v1566_v63 = vadd.f32 %v1565_v62, %v1564_v60  ;;  %1691 = vmatprep.subr.bf16.mxu0 %v2015_v61  ;;  %v399_v0 = vadd.f32 %v1563_v59, %v1431_v41 }
 0x1d3   :  { %1692 = vmatpush3.bf16.msra.mxu0 %v2015_v61 }
 0x1d4   :  { %v402_v1 = vadd.f32 %v1566_v63, %v1431_v41 }
 0x1d6   :  { %v415_v2 = vpack.c.bf16 %v402_v1, %v399_v0  ;;  %v1567_v3 = vpop.f32.mrb[12].mxu1 }
 0x1d7   :  { %v1568_v4 = vpop.f32.mrb[13].mxu1 }
 0x1d8   :  { %v1569_v5 = vadd.f32 %v1568_v4, %v1567_v3  ;;  %v1570_v6 = vpop.f32.mrb[14].mxu1  ;;  %v419_v7 = vmax.bf16 %v1825_v36, %v415_v2 }
 0x1d9   :  { %v1571_v8 = vpop.f32.mrb[15].mxu1 }
 0x1da   :  { %v1572_v9 = vadd.f32 %v1571_v8, %v1570_v6  ;;  %1693 = vmatprep.subr.bf16.mxu0 %v419_v7  ;;  %v407_v12 = vadd.f32 %v1569_v5, %v1431_v41 }
 0x1db   :  { %1694 = vmatpush3.bf16.msra.mxu0 %v419_v7 }
 0x1dc   :  { %v410_v13 = vadd.f32 %v1572_v9, %v1431_v41 }
 0x1de   :  { %v416_v14 = vpack.c.bf16 %v410_v13, %v407_v12 }
 0x1e0   :  { %v420_v15 = vmax.bf16 %v1825_v36, %v416_v14 }
 0x1e2   :  { %1695 = vmatprep.subr.bf16.mxu0 %v420_v15 }
 0x1e3   :  { %1696 = vmatpush3.bf16.msra.mxu0 %v420_v15 }
 0x1e4   :  { %1581 = vmatprep.subr.bf16.mxu0 %v1748_v17 }
 0x1e6   :  { %1698 = vmatmul.mubr.msk.bf16.vlgmr.msra.gmra.mrb[8].mxu0 %vm115_vm0, %v1953_v10 }
 0x1e7   :  { %1701 = vmatprep.mubr.msk.bf16.mxu0 %vm115_vm0, %v1958_v11  ;;  %1582 = vmatpush3.bf16.msra.mxu0 %v1749_v18 }
 0x1e8   :  { %1583 = vmatprep.subr.bf16.mxu0 %v1750_v19 }
 0x1eb   :  { %1584 = vmatpush3.bf16.msra.mxu0 %v1751_v20 }
 0x1ec   :  { %1585 = vmatprep.subr.bf16.mxu0 %v1752_v21 }
 0x1ee   :  { %1702 = vmatmul.mubr.msk.bf16.gmra.mrb[12].mxu0 %vm115_vm0, %v1979_v16 }
 0x1ef   :  { %673 = vmatprep.mubr.bf16.mxu0 %v417_v51  ;;  %1586 = vmatpush3.bf16.msra.mxu0 %v1753_v22 }
 0x1f0   :  { %1587 = vmatprep.subr.bf16.mxu0 %v1754_v23 }
 0x1f3   :  { %1588 = vmatpush3.bf16.msra.mxu0 %v1755_v24 }
 0x1f4   :  { %1589 = vmatprep.subr.bf16.mxu0 %v1756_v25 }
 0x1f7   :  { %1590 = vmatpush3.bf16.msra.mxu0 %v1757_v26  ;;  %v1764_v26 = vld [vmem:[%s2278_s10 + $0x40] sm:$0xff]  }
 0x1f8   :  { %1591 = vmatprep.subr.bf16.mxu0 %v1758_v27  ;;  %v1765_v27 = vld [vmem:[%s2278_s10] sm:$0xff]  }
 0x1fb   :  { %1592 = vmatpush3.bf16.msra.mxu0 %v1759_v28  ;;  %v1769_v28 = vld [vmem:[%s2278_s10 + $0x10] sm:$0xff]  }
 0x1fc   :  { %1593 = vmatprep.subr.bf16.mxu0 %v1760_v29  ;;  %v1770_v29 = vld [vmem:[%s2278_s10 + $0x58] sm:$0xff]  }
 0x1ff   :  { %1594 = vmatpush3.bf16.msra.mxu0 %v1761_v30  ;;  %v1771_v30 = vld [vmem:[%s2278_s10 + $0x18] sm:$0xff]  }
 0x200   :  { %1595 = vmatprep.subr.bf16.mxu0 %v1762_v31  ;;  %v1772_v31 = vld [vmem:[%s2278_s10 + $0x60] sm:$0xff]  }
 0x203   :  { %1596 = vmatpush3.bf16.msra.mxu0 %v1763_v32  ;;  %v1773_v32 = vld [vmem:[%s2278_s10 + $0x20] sm:$0xff]  }
 0x204   :  { %1629 = vmatprep.subr.bf16.mxu0 %v1764_v26 }
 0x2b9   :  { %v1699_v33 = vpop.f32.mrb[8].mxu0 }
 0x2ba   :  { %v455_v34 = vpop.f32.mrb[9].mxu0 }
 0x2bb   :  { %v1700_v35 = vpop.f32.mrb[10].mxu0 }
 0x2bc   :  { %v487_v37 = vpack.c.bf16 %v1700_v35, %v1699_v33  ;;  %v458_v38 = vpop.f32.mrb[11].mxu0  ;;  %v1774_v33 = vld [vmem:[%s2278_s10 + $0x68] sm:$0xff]   ;;  %v1776_v35 = vld [vmem:[%s2278_s10 + $0x70] sm:$0xff]  }
 0x2bd   :  { %v486_v39 = vpack.c.bf16 %v458_v38, %v455_v34  ;;  %v1775_v34 = vld [vmem:[%s2278_s10 + $0x28] sm:$0xff]  }
 0x2bf   :  { %674 = vmatmul.mubr.bf16.vlgmr.msra.gmra.mrb[16].mxu0 %v486_v39 }
 0x2c0   :  { %681 = vmatprep.mubr.bf16.mxu0 %v2015_v61  ;;  %1630 = vmatpush3.bf16.msra.mxu0 %v1765_v27 }
 0x2c1   :  { %v1703_v40 = vpop.f32.mrb[12].mxu0 }
 0x2c2   :  { %v471_v41 = vpop.f32.mrb[13].mxu0 }
 0x2c3   :  { %v1704_v42 = vpop.f32.mrb[14].mxu0 }
 0x2c4   :  { %v489_v43 = vpack.c.bf16 %v1704_v42, %v1703_v40  ;;  %v474_v44 = vpop.f32.mrb[15].mxu0 }
 0x2c5   :  { %v488_v45 = vpack.c.bf16 %v474_v44, %v471_v41 }
 0x2c7   :  { %682 = vmatmul.mubr.bf16.gmra.mrb[20].mxu0 %v487_v37  ;;  %v1777_v37 = vld [vmem:[%s2278_s10 + $0x30] sm:$0xff]  }
 0x2c8   :  { %689 = vmatprep.mubr.bf16.mxu0 %v419_v7 }
 0x2cf   :  { %690 = vmatmul.mubr.bf16.gmra.mrb[24].mxu0 %v488_v45 }
 0x2d0   :  { %697 = vmatprep.mubr.bf16.mxu0 %v420_v15 }
 0x2d7   :  { %698 = vmatmul.mubr.bf16.gmra.mrb[28].mxu0 %v489_v43 }
 0x392   :  { %v1597_v46 = vpop.f32.mrb[16].mxu0 }
 0x393   :  { %v1598_v47 = vpop.f32.mrb[17].mxu0 }
 0x394   :  { %v1599_v48 = vadd.f32 %v1598_v47, %v1597_v46  ;;  %v1600_v49 = vpop.f32.mrb[18].mxu0 }
 0x395   :  { %v1601_v51 = vpop.f32.mrb[19].mxu0 }
 0x396   :  { %v1602_v52 = vadd.f32 %v1601_v51, %v1600_v49  ;;  %v676_v53 = vadd.f32 %v1599_v48, %v1452_v50  ;;  %v1778_v51 = vld [vmem:[%s2278_s10 + $0x78] sm:$0xff]  }
 0x398   :  { %v679_v54 = vadd.f32 %v1602_v52, %v1452_v50  ;;  %v1779_v52 = vld [vmem:[%s2278_s10 + $0x38] sm:$0xff]  }
 0x39a   :  { %v706_v55 = vpack.c.bf16 %v679_v54, %v676_v53  ;;  %v1603_v56 = vpop.f32.mrb[20].mxu0  ;;  %v878_v53 = vld [vmem:[%s2280_s3] sm:$0xff] }
 0x39b   :  { %v1604_v57 = vpop.f32.mrb[21].mxu0  ;;  %882 = vperm.xlu0 %1723, %v878_v53   ;;  %v1780_v54 = vld [vmem:[%s2281_s12] ss:$8 sps:$4 sm:$0xff]  }
 0x39c   :  { %v1605_v58 = vadd.f32 %v1604_v57, %v1603_v56  ;;  %v1606_v59 = vpop.f32.mrb[22].mxu0  ;;  %v710_v60 = vmax.bf16 %v1825_v36, %v706_v55  ;;  %v1782_v55 = vld [vmem:[%s2281_s12 + $0x4] ss:$8 sps:$4 sm:$0xff]   ;;  %v1785_v56 = vld [vmem:[%s2281_s12 + $0x14] ss:$8 sps:$4 sm:$0xff]  }
 0x39d   :  { %v1607_v61 = vpop.f32.mrb[23].mxu0  ;;  %v1783_v57 = vld [vmem:[%s2281_s12 + $0x10] ss:$8 sps:$4 sm:$0xff]  }
 0x39e   :  { %v1608_v62 = vadd.f32 %v1607_v61, %v1606_v59  ;;  %1705 = vmatprep.subr.bf16.mxu1 %v710_v60  ;;  %v684_v63 = vadd.f32 %v1605_v58, %v1452_v50  ;;  %v1788_v58 = vld [vmem:[%s2281_s12 + $0x24] ss:$8 sps:$4 sm:$0xff]   ;;  %v1786_v59 = vld [vmem:[%s2281_s12 + $0x20] ss:$8 sps:$4 sm:$0xff]   ;;  %v1789_v61 = vld [vmem:[%s2281_s12 + $0x30] ss:$8 sps:$4 sm:$0xff]  }
 0x39f   :  { %1706 = vmatpush3.bf16.msra.mxu1 %v710_v60 }
 0x3a0   :  { %v687_v0 = vadd.f32 %v1608_v62, %v1452_v50  ;;  %v1794_v62 = vld [vmem:[%s2281_s12 + $0x44] ss:$8 sps:$4 sm:$0xff]  }
 0x3a2   :  { %v707_v1 = vpack.c.bf16 %v687_v0, %v684_v63  ;;  %v1609_v2 = vpop.f32.mrb[24].mxu0  ;;  %v1792_v63 = vld [vmem:[%s2281_s12 + $0x40] ss:$8 sps:$4 sm:$0xff]   ;;  %v1797_v0 = vld [vmem:[%s2281_s12 + $0x54] ss:$8 sps:$4 sm:$0xff]  }
 0x3a3   :  { %v1610_v3 = vpop.f32.mrb[25].mxu0 }
 0x3a4   :  { %v1611_v4 = vadd.f32 %v1610_v3, %v1609_v2  ;;  %v1612_v5 = vpop.f32.mrb[26].mxu0  ;;  %v2081_v6 = vmax.bf16 %v1825_v36, %v707_v1  ;;  %v1795_v1 = vld [vmem:[%s2281_s12 + $0x50] ss:$8 sps:$4 sm:$0xff]  }
 0x3a5   :  { %v1613_v7 = vpop.f32.mrb[27].mxu0 }
 0x3a6   :  { %v1614_v8 = vadd.f32 %v1613_v7, %v1612_v5  ;;  %1707 = vmatprep.subr.bf16.mxu1 %v2081_v6  ;;  %v692_v9 = vadd.f32 %v1611_v4, %v1452_v50 }
 0x3a7   :  { %1708 = vmatpush3.bf16.msra.mxu1 %v2081_v6 }
 0x3a8   :  { %v695_v12 = vadd.f32 %v1614_v8, %v1452_v50  ;;  %v1800_v8 = vld [vmem:[%s2281_s12 + $0x64] ss:$8 sps:$4 sm:$0xff]  }
 0x3aa   :  { %v708_v13 = vpack.c.bf16 %v695_v12, %v692_v9  ;;  %v1615_v14 = vpop.f32.mrb[28].mxu0  ;;  %v1798_v9 = vld [vmem:[%s2281_s12 + $0x60] ss:$8 sps:$4 sm:$0xff]   ;;  %v1803_v12 = vld [vmem:[%s2281_s12 + $0x74] ss:$8 sps:$4 sm:$0xff]  }
 0x3ab   :  { %v1616_v15 = vpop.f32.mrb[29].mxu0 }
 0x3ac   :  { %v1617_v17 = vadd.f32 %v1616_v15, %v1615_v14  ;;  %v1618_v18 = vpop.f32.mrb[30].mxu0  ;;  %v712_v19 = vmax.bf16 %v1825_v36, %v708_v13  ;;  %v1801_v13 = vld [vmem:[%s2281_s12 + $0x70] ss:$8 sps:$4 sm:$0xff]   ;;  %v1474_v14 = vld [vmem:[%s2282_s11] ss:$0 sm:$0xff] }
 0x3ad   :  { %v1619_v20 = vpop.f32.mrb[31].mxu0 }
 0x3ae   :  { %v1620_v21 = vadd.f32 %v1619_v20, %v1618_v18  ;;  %1709 = vmatprep.subr.bf16.mxu1 %v712_v19  ;;  %v700_v22 = vadd.f32 %v1617_v17, %v1452_v50 }
 0x3af   :  { %1710 = vmatpush3.bf16.msra.mxu1 %v712_v19 }
 0x3b0   :  { %v703_v23 = vadd.f32 %v1620_v21, %v1452_v50  ;;  %v791_v50 = vld [vmem:[%s2279_s2] sm:$0xf] }
 0x3b2   :  { %v709_v24 = vpack.c.bf16 %v703_v23, %v700_v22 }
 0x3b4   :  { %v713_v25 = vmax.bf16 %v1825_v36, %v709_v24 }
 0x3b6   :  { %1711 = vmatprep.subr.bf16.mxu1 %v713_v25 }
 0x3b7   :  { %1712 = vmatpush3.bf16.msra.mxu1 %v713_v25 }
 0x3b8   :  { %803 = vmatprep.subr.bf16.mxu1 %v710_v60  ;;  %v1791_v60 = vld [vmem:[%s2281_s12 + $0x34] ss:$8 sps:$4 sm:$0xff]  }
 0x3ba   :  { %1714 = vmatmul.mubr.msk.bf16.vlgmr.msra.gmra.mrb[16].mxu1 %vm115_vm0, %v1953_v10  ;;  %v1766_v10 = vld [vmem:[%s2278_s10 + $0x48] sm:$0xff]  }
 0x3bb   :  { %1717 = vmatprep.mubr.msk.bf16.mxu1 %vm115_vm0, %v1958_v11  ;;  %v1767_v11 = vld [vmem:[%s2278_s10 + $0x8] sm:$0xff]   ;;  %1631 = vmatprep.subr.bf16.mxu0 %v1766_v10  ;;  %v1045_v10 = vld [vmem:[%s2283_s13] sm:$0x3] }
 0x3bc   :  { %1632 = vmatpush3.bf16.msra.mxu0 %v1767_v11 }
 0x3c2   :  { %1718 = vmatmul.mubr.msk.bf16.gmra.mrb[20].mxu1 %vm115_vm0, %v1979_v16  ;;  %v1768_v16 = vld [vmem:[%s2278_s10 + $0x50] sm:$0xff]  }
 0x3c3   :  { %835 = vmatprep.mubr.bf16.mxu1 %v1825_v36  ;;  %1633 = vmatprep.subr.bf16.mxu0 %v1768_v16 }
 0x3c4   :  { %1634 = vmatpush3.bf16.msra.mxu0 %v1769_v28 }
 0x3c5   :  { %1635 = vmatprep.subr.bf16.mxu0 %v1770_v29 }
 0x3c8   :  { %1636 = vmatpush3.bf16.msra.mxu0 %v1771_v30 }
 0x3c9   :  { %1637 = vmatprep.subr.bf16.mxu0 %v1772_v31 }
 0x3cc   :  { %1638 = vmatpush3.bf16.msra.mxu0 %v1773_v32 }
 0x3cd   :  { %1639 = vmatprep.subr.bf16.mxu0 %v1774_v33 }
 0x3d0   :  { %1640 = vmatpush3.bf16.msra.mxu0 %v1775_v34 }
 0x3d1   :  { %1641 = vmatprep.subr.bf16.mxu0 %v1776_v35  ;;  %v1187_v35 = vld [vmem:[%s2268_s4] sm:$0xff] (!%p1507_p0) }
 0x3d4   :  { %1642 = vmatpush3.bf16.msra.mxu0 %v1777_v37  ;;  %v1826_v37 = vmov (!%p1507_p0), 0  }
 0x3d5   :  { %1643 = vmatprep.subr.bf16.mxu0 %v1778_v51  ;;  %1804 = vset.pattern.permute.xlu0 (!%p1507_p0), %v1826_v37 }
 0x3d6   :  { %1190 = vperm.xlu0 (!%p1507_p0), %1804, %v1187_v35  }
 0x3d8   :  { %1644 = vmatpush3.bf16.msra.mxu0 %v1779_v52 }
 0x41a   :  { %v883_v15 = vpop.permute.xlu0 %882 }
 0x41b   :  { %v891_v18 = vmul.f32 %v1474_v14, %v883_v15 }
 0x48d   :  { %v1715_v38 = vpop.f32.mrb[16].mxu1 }
 0x48e   :  { %v748_v39 = vpop.f32.mrb[17].mxu1 }
 0x48f   :  { %v1716_v40 = vpop.f32.mrb[18].mxu1 }
 0x490   :  { %v780_v41 = vpack.c.bf16 %v1716_v40, %v1715_v38  ;;  %v751_v42 = vpop.f32.mrb[19].mxu1  ;;  %v1191_v40 = vpop.permute.xlu0 (!%p1507_p0), %1190 }
 0x491   :  { %v779_v43 = vpack.c.bf16 %v751_v42, %v748_v39 }
 0x493   :  { %804 = vmatpush1.bf16.msra.mxu1 %v779_v43 }
 0x494   :  { %805 = vmatprep.subr.bf16.mxu1 %v2081_v6 }
 0x495   :  { %v1719_v44 = vpop.f32.mrb[20].mxu1 }
 0x496   :  { %v764_v45 = vpop.f32.mrb[21].mxu1 }
 0x497   :  { %v1720_v46 = vpop.f32.mrb[22].mxu1  ;;  %806 = vmatpush1.bf16.msra.mxu1 %v780_v41 }
 0x498   :  { %v782_v47 = vpack.c.bf16 %v1720_v46, %v1719_v44  ;;  %v767_v48 = vpop.f32.mrb[23].mxu1  ;;  %807 = vmatprep.subr.bf16.mxu1 %v712_v19 }
 0x499   :  { %v781_v49 = vpack.c.bf16 %v767_v48, %v764_v45 }
 0x49b   :  { %808 = vmatpush1.bf16.msra.mxu1 %v781_v49 }
 0x49c   :  { %809 = vmatprep.subr.bf16.mxu1 %v713_v25  ;;  %v1047_v25 = vlaneseq }
 0x49e   :  { %v1048_v26 = vshrl.u32 %v1047_v25, 7 }
 0x49f   :  { %810 = vmatpush1.bf16.msra.mxu1 %v782_v47 }
 0x4a0   :  { %1137 = vmatprep.subr.bf16.mxu1 %v1782_v55  ;;  %v1049_v27 = vsub.s32 0, %v1048_v26  ;;  %v1053_v11 = vsub.s32 1, %v1048_v26 }
 0x4a2   :  { %1473 = vmatmul.mubr.msk.bf16.vlgmr.msra.gmra.mrb[24].mxu1 %vm115_vm0, %v791_v50  ;;  %v1050_v16 = vrot.slane %v1045_v10, %v1049_v27  ;;  %v1054_v28 = vrot.slane %v1045_v10, %v1053_v11 }
 0x4a3   :  { %1169 = vmatprep.mubr.bf16.mxu1 %v1825_v36  ;;  %1138 = vmatpush1.bf16.msra.mxu1 %v1780_v54 }
 0x4a4   :  { %1139 = vmatprep.subr.bf16.mxu1 %v1785_v56 }
 0x4a7   :  { %1140 = vmatpush1.bf16.msra.mxu1 %v1783_v57 }
 0x4a8   :  { %1141 = vmatprep.subr.bf16.mxu1 %v1788_v58 }
 0x4ab   :  { %1142 = vmatpush1.bf16.msra.mxu1 %v1786_v59 }
 0x4ac   :  { %1143 = vmatprep.subr.bf16.mxu1 %v1791_v60 }
 0x4af   :  { %1144 = vmatpush1.bf16.msra.mxu1 %v1789_v61 }
 0x4b0   :  { %1145 = vmatprep.subr.bf16.mxu1 %v1794_v62 }
 0x4b3   :  { %1146 = vmatpush1.bf16.msra.mxu1 %v1792_v63 }
 0x4b4   :  { %1147 = vmatprep.subr.bf16.mxu1 %v1797_v0 }
 0x4b7   :  { %1148 = vmatpush1.bf16.msra.mxu1 %v1795_v1 }
 0x4b8   :  { %1149 = vmatprep.subr.bf16.mxu1 %v1800_v8 }
 0x4bb   :  { %1150 = vmatpush1.bf16.msra.mxu1 %v1798_v9 }
 0x4bc   :  { %1151 = vmatprep.subr.bf16.mxu1 %v1803_v12 }
 0x4bf   :  { %1152 = vmatpush1.bf16.msra.mxu1 %v1801_v13 }
 0x575   :  { %v837_v2 = vpop.f32.mrb[24].mxu1 }
 0x576   :  { %v839_v3 = vpop.f32.mrb[25].mxu1  ;;  %v844_v6 = vpack.c.bf16 %v837_v2, %v837_v2 }
 0x577   :  { %v845_v4 = vpack.c.bf16 %v839_v3, %v839_v3  ;;  %v841_v5 = vpop.f32.mrb[26].mxu1 }
 0x578   :  { %v842_v7 = vpop.f32.mrb[27].mxu1 }
 0x579   :  { %1020 = vmatprep.mubr.bf16.mxu0 %v845_v4 }
 0x57a   :  { %1021 = vmatmul.mubr.bf16.vlgmr.msra.gmra.mrb[32].mxu0 %v844_v6 }
 0x64d   :  { %v1645_v17 = vpop.f32.mrb[32].mxu0 }
 0x64e   :  { %v1646_v19 = vpop.f32.mrb[33].mxu0 }
 0x64f   :  { %v1647_v20 = vadd.f32 %v1646_v19, %v1645_v17  ;;  %v1648_v21 = vpop.f32.mrb[34].mxu0 }
 0x650   :  { %v1649_v22 = vpop.f32.mrb[35].mxu0 }
 0x651   :  { %v1023_v23 = vadd.f32 %v1647_v20, %v891_v18 }
 0x653   :  { %v1028_v24 = vpack.c.bf16 %v1023_v23, %v1023_v23 }
 0x655   :  { %1170 = vmatmul.mubr.bf16.vlgmr.msra.gmra.mrb[28].mxu1 %v1028_v24 }
 0x726   :  { %1184 = sbr.rel (%p1507_p0) target bundleno = 1892 (0x764), region = 69 }
 0x728   :  { %v1171_v29 = vpop.f32.mrb[28].mxu1 }
 0x729   :  { %v1172_v30 = vadd.f32 %v1171_v29, %v1050_v16  ;;  %v1173_v31 = vpop.f32.mrb[29].mxu1 }
 0x72a   :  { %v1174_v32 = vadd.f32 %v1173_v31, %v1054_v28  ;;  %v1175_v33 = vpop.f32.mrb[30].mxu1 }
 0x72b   :  { %1178 = vst [vmem:[#allocation3] sm:$0xff] %v1172_v30  ;;  %v1176_v34 = vpop.f32.mrb[31].mxu1 }
 0x72c   :  { %1179 = vst [vmem:[#allocation3 + $0x8] sm:$0xff] %v1174_v32 }
 0x732   :  { %v1185_v38 = vld [vmem:[#allocation3] sm:$0xff] }
 0x733   :  { %v1186_v39 = vld [vmem:[#allocation3 + $0x8] sm:$0xff]  ;;  %v1193_v41 = vmul.f32 %v1191_v40, %v1185_v38 }
 0x734   :  { %v1194_v42 = vmul.f32 %v1191_v40, %v1186_v39 }
 0x735   :  { %v1195_v43 = vrot.slane %v1193_v41, 4 }
 0x736   :  { %v1201_v44 = vrot.slane %v1194_v42, 4 }
 0x737   :  { %v1196_v45 = vadd.f32 %v1195_v43, %v1193_v41 }
 0x738   :  { %v1202_v46 = vadd.f32 %v1201_v44, %v1194_v42 }
 0x739   :  { %v1197_v47 = vrot.slane %v1196_v45, 2 }
 0x73a   :  { %v1203_v48 = vrot.slane %v1202_v46, 2 }
 0x73b   :  { %v1198_v49 = vadd.f32 %v1197_v47, %v1196_v45 }
 0x73c   :  { %v1204_v50 = vadd.f32 %v1203_v48, %v1202_v46 }
 0x73d   :  { %v1199_v51 = vrot.slane %v1198_v49, 1 }
 0x73e   :  { %v1205_v52 = vrot.slane %v1204_v50, 1 }
 0x73f   :  { %v1200_v53 = vadd.f32 %v1199_v51, %v1198_v49 }
 0x740   :  { %v1206_v54 = vadd.f32 %v1205_v52, %v1204_v50 }
 0x741   :  { %v1207_v55 = vsub.f32 %v1185_v38, %v1200_v53 }
 0x742   :  { %v1208_v56 = vsub.f32 %v1186_v39, %v1206_v54 }
 0x743   :  { %v1209_v57 = vmul.f32 %v1207_v55, %v1207_v55 }
 0x744   :  { %v1210_v58 = vmul.f32 %v1208_v56, %v1208_v56 }
 0x745   :  { %v1211_v59 = vmul.f32 %v1209_v57, %v1191_v40 }
 0x746   :  { %v1212_v60 = vmul.f32 %v1210_v58, %v1191_v40 }
 0x747   :  { %v1213_v61 = vrot.slane %v1211_v59, 4 }
 0x748   :  { %v1219_v62 = vrot.slane %v1212_v60, 4 }
 0x749   :  { %v1214_v63 = vadd.f32 %v1213_v61, %v1211_v59 }
 0x74a   :  { %v1220_v0 = vadd.f32 %v1219_v62, %v1212_v60 }
 0x74b   :  { %v1215_v1 = vrot.slane %v1214_v63, 2 }
 0x74c   :  { %v1221_v2 = vrot.slane %v1220_v0, 2 }
 0x74d   :  { %v1216_v3 = vadd.f32 %v1215_v1, %v1214_v63 }
 0x74e   :  { %v1222_v4 = vadd.f32 %v1221_v2, %v1220_v0 }
 0x74f   :  { %v1217_v5 = vrot.slane %v1216_v3, 1 }
 0x750   :  { %v1223_v6 = vrot.slane %v1222_v4, 1 }
 0x751   :  { %v1218_v7 = vadd.f32 %v1217_v5, %v1216_v3 }
 0x752   :  { %v1224_v8 = vadd.f32 %v1223_v6, %v1222_v4 }
 0x753   :  { %v1225_v9 = vadd.f32 1e-05, %v1218_v7 }
 0x754   :  { %v1226_v12 = vadd.f32 1e-05, %v1224_v8 }
 0x755   :  { %1805 = vrsqrt.f32 %v1225_v9 }
 0x756   :  { %1807 = vrsqrt.f32 %v1226_v12 }
 0x75f   :  { %v1806_v13 = vpop.eup %1805 }
 0x760   :  { %v1808_v14 = vpop.eup %1807  ;;  %v1229_v15 = vmul.f32 %v1806_v13, %v1207_v55 }
 0x761   :  { %v1230_v17 = vmul.f32 %v1808_v14, %v1208_v56 }
 0x762   :  { %1231 = vst [vmem:[#allocation3] sm:$0xff] %v1229_v15 }
 0x763   :  { %1232 = vst [vmem:[#allocation3 + $0x8] sm:$0xff] %v1230_v17 }
 0x764 PF:  { %v1809_v18 = vld [vmem:[%s2270_s14 + $0x40] sm:$0xff]   ;;  %v1811_v20 = vld [vmem:[%s2270_s14 + $0x48] sm:$0xff]   ;;  %v1813_v22 = vld [vmem:[%s2270_s14 + $0x50] sm:$0xff]  }
 0x765   :  { %v1810_v19 = vld [vmem:[%s2270_s14] sm:$0xff]   ;;  %1651 = vmatprep.subr.bf16.mxu0 %v1809_v18  ;;  %v1812_v21 = vld [vmem:[%s2270_s14 + $0x8] sm:$0xff]   ;;  %v1814_v23 = vld [vmem:[%s2270_s14 + $0x10] sm:$0xff]  }
 0x766   :  { %1652 = vmatpush3.bf16.msra.mxu0 %v1810_v19  ;;  %v1815_v24 = vld [vmem:[%s2270_s14 + $0x58] sm:$0xff]   ;;  %v1817_v26 = vld [vmem:[%s2270_s14 + $0x60] sm:$0xff]   ;;  %v1819_v10 = vld [vmem:[%s2270_s14 + $0x68] sm:$0xff]  }
 0x767   :  { %1653 = vmatprep.subr.bf16.mxu0 %v1811_v20  ;;  %v1816_v25 = vld [vmem:[%s2270_s14 + $0x18] sm:$0xff]   ;;  %v1818_v27 = vld [vmem:[%s2270_s14 + $0x20] sm:$0xff]   ;;  %v1820_v28 = vld [vmem:[%s2270_s14 + $0x28] sm:$0xff]  }
 0x768   :  { %v1821_v30 = vld [vmem:[%s2270_s14 + $0x70] sm:$0xff]   ;;  %v1823_v33 = vld [vmem:[%s2270_s14 + $0x78] sm:$0xff]   ;;  %v1508_v39 = vld [vmem:[%s2271_s15] ss:$0 sm:$0xff] }
 0x769   :  { %v1822_v31 = vld [vmem:[%s2270_s14 + $0x30] sm:$0xff]   ;;  %v1233_v32 = vld [vmem:[#allocation3] sm:$0xff]  ;;  %v1824_v35 = vld [vmem:[%s2270_s14 + $0x38] sm:$0xff]  }
 0x76a   :  { %1654 = vmatpush3.bf16.msra.mxu0 %v1812_v21  ;;  %v1234_v11 = vld [vmem:[#allocation3 + $0x8] sm:$0xff]  ;;  %v1235_v34 = vpack.c.bf16 %v1233_v32, %v1233_v32 }
 0x76b   :  { %1655 = vmatprep.subr.bf16.mxu0 %v1813_v22  ;;  %v1236_v16 = vpack.c.bf16 %v1234_v11, %v1234_v11 }
 0x76c   :  { %v1237_v37 = vmax.bf16 %v1825_v36, %v1235_v34 }
 0x76d   :  { %v1238_v29 = vmax.bf16 %v1825_v36, %v1236_v16 }
 0x76e   :  { %1656 = vmatpush3.bf16.msra.mxu0 %v1814_v23 }
 0x76f   :  { %1657 = vmatprep.subr.bf16.mxu0 %v1815_v24  ;;  %1406 = vmatprep.mubr.bf16.mxu0 %v1238_v29 }
 0x772   :  { %1658 = vmatpush3.bf16.msra.mxu0 %v1816_v25 }
 0x773   :  { %1659 = vmatprep.subr.bf16.mxu0 %v1817_v26 }
 0x776   :  { %1660 = vmatpush3.bf16.msra.mxu0 %v1818_v27 }
 0x777   :  { %1661 = vmatprep.subr.bf16.mxu0 %v1819_v10 }
 0x77a   :  { %1662 = vmatpush3.bf16.msra.mxu0 %v1820_v28 }
 0x77b   :  { %1663 = vmatprep.subr.bf16.mxu0 %v1821_v30 }
 0x77e   :  { %1664 = vmatpush3.bf16.msra.mxu0 %v1822_v31 }
 0x77f   :  { %1665 = vmatprep.subr.bf16.mxu0 %v1823_v33 }
 0x782   :  { %1666 = vmatpush3.bf16.msra.mxu0 %v1824_v35 }
 0x785   :  { %1407 = vmatmul.mubr.bf16.vlgmr.msra.gmra.mrb[36].mxu0 %v1237_v37 }
 0x858   :  { %v1667_v38 = vpop.f32.mrb[36].mxu0 }
 0x859   :  { %v1668_v40 = vpop.f32.mrb[37].mxu0 }
 0x85a   :  { %v1669_v41 = vadd.f32 %v1668_v40, %v1667_v38  ;;  %v1670_v42 = vpop.f32.mrb[38].mxu0 }
 0x85b   :  { %v1671_v43 = vpop.f32.mrb[39].mxu0 }
 0x85c   :  { %v1409_v44 = vadd.f32 %v1669_v41, %v1508_v39 }
 0x85e   :  { %1414 = vst [vmem:[%s2272_s16] sm:$0xff] %v1409_v44 }

</bundles_post_ra>
